<compile_context>
chip_gen: v6e
topology: v6e:2x2x1
jax: 0.10.0
libtpu: 0.0.40
codegen_flags: <defaults>
</compile_context>

<pallas_src>
import jax
import jax.numpy as jnp
from jax.experimental import pallas as pl
from jax.experimental.pallas import tpu as pltpu


def _round_up(x, m):
    return (x + m - 1) // m * m


def _default_max_tm():
    """Per-generation row-tile cap (review: v7x wants ~4096, v6e/v5e ~2048)."""
    try:
        kind = jax.devices()[0].device_kind.lower()
    except Exception:
        kind = ""
    if "v7" in kind:
        return 4096
    return 2048


def decoder_kernel(x_ref, w1_ref, b1_ref, w2_ref, b2_ref, o_ref):
    # x_ref:  (tm, 2H)   w1_ref: (2H, H)   b1_ref: (1, H)
    # w2_ref: (H, O)     b2_ref: (1, O)    o_ref:  (tm, O)
    x = x_ref[...]
    h = jnp.dot(x, w1_ref[...], preferred_element_type=jnp.float32) + b1_ref[...]
    # LeakyReLU, default negative_slope = 0.01 (matches torch.nn.LeakyReLU()).
    h = jnp.maximum(h, 0.01 * h)
    # Note: if weights are bf16 this downcasts the f32 intermediate before the 2nd
    # matmul (MXU wants matching input dtypes); exact for the f32 path tested below.
    out = jnp.dot(h.astype(w2_ref.dtype), w2_ref[...],
                  preferred_element_type=jnp.float32) + b2_ref[...]
    o_ref[...] = out.astype(o_ref.dtype)


def decoder_forward(x, w1, b1, w2, b2, *, max_tm=None):
    B, K1 = x.shape            # K1 = 2 * hidden_dim
    H = w1.shape[1]
    O = w2.shape[1]

    if max_tm is None:
        max_tm = _default_max_tm()

    # Row alignment follows dtype sublane packing: f32 -> 8, bf16 -> 16, int8/fp8 -> 32.
    itemsize = jnp.dtype(x.dtype).itemsize
    row_align = max(8, 8 * (4 // max(itemsize, 1)))

    # Big row tiles to amortize the ~0.35 us per-grid-step overhead; the partial last
    # block (when tm does not divide B) is masked by Pallas -- no wrapper-side padding.
    tm = min(max_tm, _round_up(B, row_align))
    n_steps = pl.cdiv(B, tm)
    if n_steps > 1:
        # Even step count keeps both v7x TensorCores busy; harmless on 1-TC chips.
        n_steps = _round_up(n_steps, 2)
        tm = _round_up(pl.cdiv(B, n_steps), row_align)
        n_steps = pl.cdiv(B, tm)

    out = pl.pallas_call(
        decoder_kernel,
        out_shape=jax.ShapeDtypeStruct((B, O), x.dtype),
        grid_spec=pltpu.PrefetchScalarGridSpec(
            num_scalar_prefetch=0,
            grid=(n_steps,),
            in_specs=[
                pl.BlockSpec((tm, K1), lambda i: (i, 0)),   # x tile (rows stream)
                pl.BlockSpec((K1, H), lambda i: (0, 0)),    # W1 (resident)
                pl.BlockSpec((1, H), lambda i: (0, 0)),     # b1 (resident)
                pl.BlockSpec((H, O), lambda i: (0, 0)),     # W2 (resident, unpadded)
                pl.BlockSpec((1, O), lambda i: (0, 0)),     # b2 (resident, unpadded)
            ],
            # Full-row-width output block: HBM-contiguous DMA, no post-kernel slice.
            out_specs=pl.BlockSpec((tm, O), lambda i: (i, 0)),
        ),
        compiler_params=pltpu.CompilerParams(
            dimension_semantics=("parallel",)),
    )(x, w1, b1, w2, b2)
    return out


def decoder_reference(x, w1, b1, w2, b2):
    h = x @ w1 + b1
    h = jnp.where(h > 0, h, 0.01 * h)
    return h @ w2 + b2


if __name__ == "__main__":
    # Small shapes consistent with the module: hidden_dim=32, out_dim=48.
    hidden_dim = 32
    out_dim = 48

    key = jax.random.PRNGKey(0)
    kx, k1, k2, k3, k4, kx2 = jax.random.split(key, 6)

    in1 = 2 * hidden_dim
    bound1 = 1.0 / jnp.sqrt(in1)
    bound2 = 1.0 / jnp.sqrt(hidden_dim)

    w1 = jax.random.uniform(k1, (2 * hidden_dim, hidden_dim), jnp.float32, -bound1, bound1)
    b1 = jax.random.uniform(k2, (1, hidden_dim), jnp.float32, -bound1, bound1)
    w2 = jax.random.uniform(k3, (hidden_dim, out_dim), jnp.float32, -bound2, bound2)
    b2 = jax.random.uniform(k4, (1, out_dim), jnp.float32, -bound2, bound2)

    # Case 1: batch=16 (multiple of 8) -> single full block.
    x = jax.random.normal(kx, (16, 2 * hidden_dim), dtype=jnp.float32)
    out = jax.block_until_ready(decoder_forward(x, w1, b1, w2, b2))
    ref = decoder_reference(x, w1, b1, w2, b2)
    assert out.shape == (16, out_dim)
    assert jnp.allclose(out, ref, atol=1e-5, rtol=1e-5), "mismatch vs reference (batch=16)"

    # Case 2: ragged batch=13 -> exercises the Pallas partial-block masking path
    # (no wrapper-side padding or slicing).
    x2 = jax.random.normal(kx2, (13, 2 * hidden_dim), dtype=jnp.float32)
    out2 = jax.block_until_ready(decoder_forward(x2, w1, b1, w2, b2))
    ref2 = decoder_reference(x2, w1, b1, w2, b2)
    assert out2.shape == (13, out_dim)
    assert jnp.allclose(out2, ref2, atol=1e-5, rtol=1e-5), "mismatch vs reference (batch=13)"

    print("KERNEL_OK")
</pallas_src>

<mosaic_0001>
module attributes {stable_mosaic.version = 11 : i64} {
  func.func @decoder_kernel(%arg0: i32, %arg1: memref<16x64xf32, #tpu.memory_space<vmem>>, %arg2: memref<64x32xf32, #tpu.memory_space<vmem>>, %arg3: memref<1x32xf32, #tpu.memory_space<vmem>>, %arg4: memref<32x48xf32, #tpu.memory_space<vmem>>, %arg5: memref<1x48xf32, #tpu.memory_space<vmem>>, %arg6: memref<16x48xf32, #tpu.memory_space<vmem>>) attributes {dimension_semantics = [#tpu.dimension_semantics<parallel>], iteration_bounds = array<i64: 1>, scalar_prefetch = 0 : i64, scratch_operands = 0 : i64, tpu.core_type = #tpu.core_type<tc>, window_params = [{transform_indices = @transform_0, window_bounds = array<i64: 16, 64>}, {pipeline_mode = #tpu.pipeline_mode<synchronous>, transform_indices = @transform_1, window_bounds = array<i64: 64, 32>}, {pipeline_mode = #tpu.pipeline_mode<synchronous>, transform_indices = @transform_2, window_bounds = array<i64: 1, 32>}, {pipeline_mode = #tpu.pipeline_mode<synchronous>, transform_indices = @transform_3, window_bounds = array<i64: 32, 48>}, {pipeline_mode = #tpu.pipeline_mode<synchronous>, transform_indices = @transform_4, window_bounds = array<i64: 1, 48>}, {transform_indices = @transform_5, window_bounds = array<i64: 16, 48>}]} {
    %c0 = arith.constant 0 : index
    %c0_0 = arith.constant 0 : index
    %0 = vector.load %arg1[%c0, %c0_0] : memref<16x64xf32, #tpu.memory_space<vmem>>, vector<16x64xf32>
    %c0_1 = arith.constant 0 : index
    %c0_2 = arith.constant 0 : index
    %1 = vector.load %arg2[%c0_1, %c0_2] : memref<64x32xf32, #tpu.memory_space<vmem>>, vector<64x32xf32>
    %cst = arith.constant dense<0.000000e+00> : vector<16x32xf32>
    %2 = tpu.matmul %0, %1, %cst {dimension_numbers = #tpu.dot_dimension_numbers<[1], [0], [0], [1], [0, 0, 1, 1], [], []>} : vector<16x64xf32>, vector<64x32xf32>, vector<16x32xf32> -> vector<16x32xf32>
    %c0_3 = arith.constant 0 : index
    %c0_4 = arith.constant 0 : index
    %3 = vector.load %arg3[%c0_3, %c0_4] : memref<1x32xf32, #tpu.memory_space<vmem>>, vector<1x32xf32>
    %4 = vector.broadcast %3 : vector<1x32xf32> to vector<16x32xf32>
    %5 = arith.addf %2, %4 : vector<16x32xf32>
    %cst_5 = arith.constant 0.00999999977 : f32
    %6 = vector.broadcast %cst_5 : f32 to vector<16x32xf32>
    %7 = arith.mulf %6, %5 : vector<16x32xf32>
    %8 = arith.maximumf %5, %7 : vector<16x32xf32>
    %c0_6 = arith.constant 0 : index
    %c0_7 = arith.constant 0 : index
    %9 = vector.load %arg4[%c0_6, %c0_7] : memref<32x48xf32, #tpu.memory_space<vmem>>, vector<32x48xf32>
    %cst_8 = arith.constant dense<0.000000e+00> : vector<16x48xf32>
    %10 = tpu.matmul %8, %9, %cst_8 {dimension_numbers = #tpu.dot_dimension_numbers<[1], [0], [0], [1], [0, 0, 1, 1], [], []>} : vector<16x32xf32>, vector<32x48xf32>, vector<16x48xf32> -> vector<16x48xf32>
    %c0_9 = arith.constant 0 : index
    %c0_10 = arith.constant 0 : index
    %11 = vector.load %arg5[%c0_9, %c0_10] : memref<1x48xf32, #tpu.memory_space<vmem>>, vector<1x48xf32>
    %12 = vector.broadcast %11 : vector<1x48xf32> to vector<16x48xf32>
    %13 = arith.addf %10, %12 : vector<16x48xf32>
    %c0_11 = arith.constant 0 : index
    %c0_12 = arith.constant 0 : index
    %14 = vector.load %arg6[%c0_11, %c0_12] : memref<16x48xf32, #tpu.memory_space<vmem>>, vector<16x48xf32>
    tpu.vector_store %arg6[%c0_11, %c0_12], %13 {strides = array<i32>} : memref<16x48xf32, #tpu.memory_space<vmem>>, vector<16x48xf32>,
    return
  }
  func.func @transform_0(%arg0: i32) -> (i32, i32) {
    %c0_i32 = arith.constant 0 : i32
    %c0_i32_0 = arith.constant 0 : i32
    return %arg0, %c0_i32 : i32, i32
  }
  func.func @transform_1(%arg0: i32) -> (i32, i32) {
    %c0_i32 = arith.constant 0 : i32
    %c0_i32_0 = arith.constant 0 : i32
    %c0_i32_1 = arith.constant 0 : i32
    return %c0_i32, %c0_i32_0 : i32, i32
  }
  func.func @transform_2(%arg0: i32) -> (i32, i32) {
    %c0_i32 = arith.constant 0 : i32
    %c0_i32_0 = arith.constant 0 : i32
    %c0_i32_1 = arith.constant 0 : i32
    return %c0_i32, %c0_i32_0 : i32, i32
  }
  func.func @transform_3(%arg0: i32) -> (i32, i32) {
    %c0_i32 = arith.constant 0 : i32
    %c0_i32_0 = arith.constant 0 : i32
    %c0_i32_1 = arith.constant 0 : i32
    return %c0_i32, %c0_i32_0 : i32, i32
  }
  func.func @transform_4(%arg0: i32) -> (i32, i32) {
    %c0_i32 = arith.constant 0 : i32
    %c0_i32_0 = arith.constant 0 : i32
    %c0_i32_1 = arith.constant 0 : i32
    return %c0_i32, %c0_i32_0 : i32, i32
  }
  func.func @transform_5(%arg0: i32) -> (i32, i32) {
    %c0_i32 = arith.constant 0 : i32
    %c0_i32_0 = arith.constant 0 : i32
    return %arg0, %c0_i32 : i32, i32
  }
}

</mosaic_0001>

<bundles_post_ra>
// kernel: tpu_custom_call.1
= control target key start
LH: loop header
LB: loop body
LE: loop exit
PB: predicated region body
PF: predicated region fallthrough
CT: control target
= control target key end

     0   :  { %vm38_vm0 = vcmask 523264   ;;  %s399_s0 = inlined_call_operand.vmem [shape: f32[16,64], index: 0, kind: input, shape index: {}]   ;;  %s400_s1 = inlined_call_operand.vmem [shape: f32[64,32], index: 1, kind: input, shape index: {}]   ;;  %s401_s2 = inlined_call_operand.vmem [shape: f32[1,32], index: 2, kind: input, shape index: {}]   ;;  %s402_s3 = inlined_call_operand.vmem [shape: f32[32,48], index: 3, kind: input, shape index: {}]   ;;  %s403_s4 = inlined_call_operand.vmem [shape: f32[1,48], index: 4, kind: input, shape index: {}]   ;;  %s404_s5 = inlined_call_operand.hbm [shape: f32[16,48], index: 5, kind: output, shape index: {}]  }
   0x1   :  { %v30_v0 = vld [vmem:[%s400_s1 + $0x38] sm:$0xff]  ;;  %v29_v1 = vld [vmem:[%s400_s1 + $0x30] sm:$0xff]  ;;  %v28_v2 = vld [vmem:[%s400_s1 + $0x28] sm:$0xff] }
   0x2   :  { %258 = vmatprep.subr.mxu0 %v30_v0  ;;  %v21_v3 = vld [vmem:[%s399_s0] sm:$0xff] }
   0x3   :  { %259 = vmatpush3.msra.mxu0 %v30_v0  ;;  %274 = vmatprep.mubr.msk.f32.mxu0 %vm38_vm0, %v21_v3 }
   0x4   :  { %260 = vmatprep.subr.mxu0 %v29_v1 }
   0x5   :  { %10 = vsyncpa [#allocation3], 0  ;;  %261 = vmatpush3.msra.mxu0 %v29_v1  ;;  %v27_v4 = vld [vmem:[%s400_s1 + $0x20] sm:$0xff]  ;;  %v26_v5 = vld [vmem:[%s400_s1 + $0x18] sm:$0xff]  ;;  %vm135_vm1 = vcmask 261120   ;;  %s313_s22 = smov [#allocation2]  }
   0x6   :  { %262 = vmatprep.subr.mxu0 %v28_v2  ;;  %v25_v6 = vld [vmem:[%s400_s1 + $0x10] sm:$0xff]  ;;  %v24_v7 = vld [vmem:[%s400_s1 + $0x8] sm:$0xff]  ;;  %v23_v8 = vld [vmem:[%s400_s1] sm:$0xff]  ;;  %s225_s23 = sshll.u32 %s313_s22, 4  ;;  %vm217_vm2 = vcmask 392192   ;;  %s226_s23 = int_to_ptr.vmem [resolvable:$true] %s225_s23 }
   0x7   :  { %263 = vmatpush3.msra.mxu0 %v28_v2  ;;  %v22_v9 = vld [vmem:[%s399_s0 + $0x8] sm:$0xff]  ;;  %v127_v10 = vld [vmem:[%s402_s3 + $0x18] sm:$0xff]  ;;  %v126_v11 = vld [vmem:[%s402_s3 + $0x10] sm:$0xff]  ;;  %p296_p1 = scmp.lt.s32.totalorder %s226_s23, %s226_s23 }
   0x8   :  { %264 = vmatprep.subr.mxu0 %v27_v4  ;;  %277 = vmatprep.subr.mxu1 %v127_v10  ;;  %v125_v12 = vld [vmem:[%s402_s3 + $0x8] sm:$0xff]  ;;  %v124_v13 = vld [vmem:[%s402_s3] sm:$0xff] }
   0x9   :  { %265 = vmatpush3.msra.mxu0 %v27_v4  ;;  %278 = vmatpush3.msra.mxu1 %v127_v10  ;;  %v236_v14 = vld [vmem:[%s401_s2] ss:$0 sm:$0xff]  ;;  %s291_s2 = scalar_lea.vmem %s226_s23, 256 }
   0xa   :  { %266 = vmatprep.subr.mxu0 %v26_v5  ;;  %279 = vmatprep.subr.mxu1 %v126_v11  ;;  %v239_v23 = vld [vmem:[%s403_s4] ss:$0 sm:$0xff]  ;;  %p292_p0 = scmp.ne.s32.totalorder %s226_s23, %s291_s2  ;;  %p297_p2 = scmp.lt.s32.totalorder %s291_s2, %s291_s2 }
   0xb   :  { %267 = vmatpush3.msra.mxu0 %v26_v5  ;;  %280 = vmatpush3.msra.mxu1 %v126_v11 }
   0xc   :  { %268 = vmatprep.subr.mxu0 %v25_v6  ;;  %281 = vmatprep.subr.mxu1 %v125_v12  ;;  %p298_p3 = por %p297_p2, %p296_p1 }
   0xd   :  { %269 = vmatpush3.msra.mxu0 %v25_v6  ;;  %282 = vmatpush3.msra.mxu1 %v125_v12 }
   0xe   :  { %270 = vmatprep.subr.mxu0 %v24_v7  ;;  %283 = vmatprep.subr.mxu1 %v124_v13  ;;  %p299_p4 = pnand %p298_p3, %p292_p0 }
   0xf   :  { %271 = vmatpush3.msra.mxu0 %v24_v7  ;;  %284 = vmatpush3.msra.mxu1 %v124_v13 }
  0x10   :  { %272 = vmatprep.subr.mxu0 %v23_v8 }
  0x11   :  { %273 = vmatpush3.msra.mxu0 %v23_v8 }
  0x12   :  { %275 = vmatmul.mubr.msk.f32.vlgmr.msra.gmra.mxu0 %vm38_vm0, %v22_v9 }
  0xd2   :  { %v276_v15 = vpop.f32.mrf.mxu0 }
  0xd3   :  { %v117_v16 = vadd.f32 %v276_v15, %v236_v14 }
  0xd4   :  { %v111_v17 = vpop.f32.mrf.mxu0 }
  0xd5   :  { %v112_v18 = vadd.f32 %v236_v14, %v111_v17  ;;  %v121_v19 = vmul.f32 0.01, %v117_v16 }
  0xd7   :  { %v120_v20 = vmul.f32 0.01, %v112_v18  ;;  %v123_v22 = vmax.f32 %v117_v16, %v121_v19 }
  0xd9   :  { %v122_v21 = vmax.f32 %v112_v18, %v120_v20 }
  0xdb   :  { %285 = vmatprep.mubr.msk.f32.mxu1 %vm135_vm1, %v122_v21 }
  0xdc   :  { %286 = vmatmul.mubr.msk.f32.vlgmr.msra.gmra.mxu1 %vm135_vm1, %v123_v22 }
 0x19c   :  { %v287_v24 = vpop.f32.mrf.mxu1 }
 0x19d   :  { %v214_v25 = vadd.f32 %v287_v24, %v239_v23 }
 0x19e   :  { %v208_v26 = vpop.f32.mrf.mxu1 }
 0x19f   :  { %219 = vst.msk [vmem:[#allocation2 + $0x8] sm:$0xff] %vm217_vm2, %v214_v25  ;;  %v209_v27 = vadd.f32 %v239_v23, %v208_v26 }
 0x1a1   :  { %218 = vst.msk [vmem:[#allocation2] sm:$0xff] %vm217_vm2, %v209_v27 }
 0x1a2   :  { %302 = shalt.err (!%p299_p4)
}
 0x1a3   :  { %s314_s24 = smov 128   ;;  %s315_s25 = smov 8  }
 0x1a4   :  { %231 = dma.vmem_to_hbm [thread:$0]  %s226_s23, 256, %s404_s5, [#allocation3], %s314_s24, %s314_s24, %s315_s25  }
 0x1a5   :  { %311 = dma.done.wait [#allocation3], 256  }
 0x1a6   :  { %312 = vsyncadd [#allocation3], 4294967040 }
 0x1a7   :  { %235 = vsyncpa [#allocation3], 1 }

</bundles_post_ra>
